<compile_context>
chip_gen: v5e
topology: v5e:2x2
jax: 0.10.0
libtpu: 0.0.40
codegen_flags: <defaults>
</compile_context>

<pallas_src>
import jax
import jax.numpy as jnp
import numpy as np
from jax.experimental import pallas as pl
from jax.experimental.pallas import tpu as pltpu


def _round_up(x, m):
    return (x + m - 1) // m * m


def _self_output_kernel(x_ref, w_ref, b_ref, o_ref):
    # x_ref: (tm, H_in)   w_ref: (H_in, H_out) resident   b_ref: (1, H_out)   o_ref: (tm, H_out)
    x = x_ref[...]
    if x.dtype != w_ref.dtype:
        x = x.astype(w_ref.dtype)            # bf16 operands -> native MXU rate, f32 accumulate
    acc = jnp.dot(x, w_ref[...], preferred_element_type=jnp.float32)
    acc = acc + b_ref[...].astype(jnp.float32)
    # Dropout is identity at inference time.
    # TODO(synk): training-mode dropout would need pltpu.prng_seed + pltpu.prng_random_bits
    # masking; omitted for eval semantics.
    # TODO(synk): the residual add of input_tensor lives in ViTDiffMAELayer per the reference
    # module, so it is intentionally NOT fused here (would be one extra tile DMA if allowed).
    o_ref[...] = acc.astype(o_ref.dtype)


def prepare_params(weight, bias, *, param_dtype=jnp.bfloat16):
    """One-time parameter prep (do at load time, NOT per forward call).

    weight: [H_out, H_in] torch nn.Linear layout.
    Returns (w_t, bias2d): w_t is [H_in, H_out] in param_dtype, bias2d is (1, H_out) f32.
    """
    w_t = jnp.asarray(weight).T.astype(param_dtype)
    b2d = jnp.asarray(bias).reshape(1, -1).astype(jnp.float32)
    return w_t, b2d


def vit_diffmae_self_output(hidden_states, input_tensor, w_t, bias2d, *, tm=1024):
    """hidden_states: [B, S, H]. w_t / bias2d come from prepare_params.

    Output dtype == hidden_states dtype (pass bf16 activations for bf16 I/O — this kernel
    is HBM-bandwidth-bound at ViT sizes, so bf16 I/O ~halves wall time vs f32 I/O).
    input_tensor mirrors the torch signature but, exactly as in the reference forward,
    it is not used here (residual lives in ViTDiffMAELayer).
    NOTE: production hidden_size should be a multiple of 128 for lane-dense stores; the
    H=32 toy shape in __main__ is only a smoke test.
    """
    del input_tensor
    B, S, H = hidden_states.shape
    H_out = w_t.shape[1]
    M = B * S

    # Row-tile sizing: biggest requested tile, but always >= 2 grid steps so the
    # "parallel" M axis shards across both TensorCores (v7x megacore).
    tm = max(8, min(_round_up(tm, 8), _round_up(pl.cdiv(M, 2), 8)))
    grid_m = pl.cdiv(M, tm)  # partial last block handled by Pallas (masked writes)

    x = hidden_states.reshape(M, H)   # lane-dense slab: H on lanes, rows on sublanes
    x_bytes = x.dtype.itemsize
    out_bytes = hidden_states.dtype.itemsize
    w_bytes = w_t.dtype.itemsize

    # VMEM budget: double-buffered x/out tiles + resident (double-buffered) weight/bias + slack.
    # (Weight could be single-buffered via pipeline_mode=pl.Buffered(1); kept default for
    #  portability — the ~1 MiB it would save is not the constraint here.)
    need = (2 * tm * H * x_bytes
            + 2 * tm * H_out * out_bytes
            + 2 * H * H_out * w_bytes
            + 2 * H_out * 4)
    vmem_limit = int(need + (8 << 20))   # no 32 MiB floor: leave headroom on v7x's 64 MiB

    cost = pl.CostEstimate(
        flops=2 * M * H * H_out,
        transcendentals=0,
        bytes_accessed=M * H * x_bytes + M * H_out * out_bytes
                       + H * H_out * w_bytes + H_out * 4,
    )

    out = pl.pallas_call(
        _self_output_kernel,
        out_shape=jax.ShapeDtypeStruct((M, H_out), hidden_states.dtype),
        grid_spec=pltpu.PrefetchScalarGridSpec(
            num_scalar_prefetch=0,
            grid=(grid_m,),
            in_specs=[
                pl.BlockSpec((tm, H), lambda i: (i, 0)),      # activation tile (pipelined)
                pl.BlockSpec((H, H_out), lambda i: (0, 0)),   # full weight, constant index -> resident
                pl.BlockSpec((1, H_out), lambda i: (0, 0)),   # bias row, constant index -> resident
            ],
            out_specs=pl.BlockSpec((tm, H_out), lambda i: (i, 0)),
        ),
        compiler_params=pltpu.CompilerParams(
            dimension_semantics=("parallel",),   # M rows shard across TCs (v7x megacore)
            vmem_limit_bytes=vmem_limit,
        ),
        cost_estimate=cost,
    )(x, w_t, bias2d)

    return out.reshape(B, S, H_out)


if __name__ == "__main__":
    # config.hidden_size = 32 ; small batch/seq consistent with a ViT block (smoke test only).
    B, S, H = 2, 8, 32
    key = jax.random.PRNGKey(0)
    k_x, k_in, k_w, k_b = jax.random.split(key, 4)

    hidden_states = jax.random.normal(k_x, (B, S, H), dtype=jnp.float32)
    input_tensor = jax.random.normal(k_in, (B, S, H), dtype=jnp.float32)
    weight = jax.random.normal(k_w, (H, H), dtype=jnp.float32) * 0.02   # torch [out, in] layout
    bias = jax.random.normal(k_b, (H,), dtype=jnp.float32) * 0.02

    # One-time parameter prep (transpose + bf16 cast), outside the per-forward path.
    w_t, b2d = prepare_params(weight, bias)

    # The tm clamp guarantees >=2 grid steps even at this tiny M=16; defaults are fine.
    out = vit_diffmae_self_output(hidden_states, input_tensor, w_t, b2d)
    jax.block_until_ready(out)

    # Reference (numpy, f32 accumulation) using the same bf16-rounded operands the kernel
    # consumes, so the check isolates kernel correctness from deliberate quantization.
    x_bf = np.asarray(hidden_states.astype(jnp.bfloat16).astype(jnp.float32)).reshape(-1, H)
    w_f = np.asarray(w_t.astype(jnp.float32))
    ref = (x_bf @ w_f + np.asarray(b2d)).reshape(B, S, H)
    np.testing.assert_allclose(np.asarray(out), ref, atol=1e-3, rtol=1e-3)

    print("KERNEL_OK")
</pallas_src>

<mosaic_0001>
module attributes {stable_mosaic.version = 11 : i64} {
  func.func @_self_output_kernel(%arg0: i32, %arg1: memref<8x32xf32, #tpu.memory_space<vmem>>, %arg2: memref<32x32xbf16, #tpu.memory_space<vmem>>, %arg3: memref<1x32xf32, #tpu.memory_space<vmem>>, %arg4: memref<8x32xf32, #tpu.memory_space<vmem>>) attributes {dimension_semantics = [#tpu.dimension_semantics<parallel>], iteration_bounds = array<i64: 2>, scalar_prefetch = 0 : i64, scratch_operands = 0 : i64, tpu.core_type = #tpu.core_type<tc>, window_params = [{transform_indices = @transform_0, window_bounds = array<i64: 8, 32>}, {pipeline_mode = #tpu.pipeline_mode<synchronous>, transform_indices = @transform_1, window_bounds = array<i64: 32, 32>}, {pipeline_mode = #tpu.pipeline_mode<synchronous>, transform_indices = @transform_2, window_bounds = array<i64: 1, 32>}, {transform_indices = @transform_3, window_bounds = array<i64: 8, 32>}]} {
    %c0 = arith.constant 0 : index
    %c0_0 = arith.constant 0 : index
    %0 = vector.load %arg1[%c0, %c0_0] : memref<8x32xf32, #tpu.memory_space<vmem>>, vector<8x32xf32>
    %1 = arith.truncf %0 : vector<8x32xf32> to vector<8x32xbf16>
    %c0_1 = arith.constant 0 : index
    %c0_2 = arith.constant 0 : index
    %2 = vector.load %arg2[%c0_1, %c0_2] : memref<32x32xbf16, #tpu.memory_space<vmem>>, vector<32x32xbf16>
    %cst = arith.constant dense<0.000000e+00> : vector<8x32xf32>
    %3 = tpu.matmul %1, %2, %cst {dimension_numbers = #tpu.dot_dimension_numbers<[1], [0], [0], [1], [0, 0, 1, 1], [], []>} : vector<8x32xbf16>, vector<32x32xbf16>, vector<8x32xf32> -> vector<8x32xf32>
    %c0_3 = arith.constant 0 : index
    %c0_4 = arith.constant 0 : index
    %4 = vector.load %arg3[%c0_3, %c0_4] : memref<1x32xf32, #tpu.memory_space<vmem>>, vector<1x32xf32>
    %5 = vector.broadcast %4 : vector<1x32xf32> to vector<8x32xf32>
    %6 = arith.addf %3, %5 : vector<8x32xf32>
    %c0_5 = arith.constant 0 : index
    %c0_6 = arith.constant 0 : index
    %7 = vector.load %arg4[%c0_5, %c0_6] : memref<8x32xf32, #tpu.memory_space<vmem>>, vector<8x32xf32>
    tpu.vector_store %arg4[%c0_5, %c0_6], %6 {strides = array<i32>} : memref<8x32xf32, #tpu.memory_space<vmem>>, vector<8x32xf32>,
    return
  }
  func.func @transform_0(%arg0: i32) -> (i32, i32) {
    %c0_i32 = arith.constant 0 : i32
    %c0_i32_0 = arith.constant 0 : i32
    return %arg0, %c0_i32 : i32, i32
  }
  func.func @transform_1(%arg0: i32) -> (i32, i32) {
    %c0_i32 = arith.constant 0 : i32
    %c0_i32_0 = arith.constant 0 : i32
    %c0_i32_1 = arith.constant 0 : i32
    return %c0_i32, %c0_i32_0 : i32, i32
  }
  func.func @transform_2(%arg0: i32) -> (i32, i32) {
    %c0_i32 = arith.constant 0 : i32
    %c0_i32_0 = arith.constant 0 : i32
    %c0_i32_1 = arith.constant 0 : i32
    return %c0_i32, %c0_i32_0 : i32, i32
  }
  func.func @transform_3(%arg0: i32) -> (i32, i32) {
    %c0_i32 = arith.constant 0 : i32
    %c0_i32_0 = arith.constant 0 : i32
    return %arg0, %c0_i32 : i32, i32
  }
}

</mosaic_0001>

<bundles_post_ra>
// kernel: tpu_custom_call.1
= control target key start
LH: loop header
LB: loop body
LE: loop exit
PB: predicated region body
PF: predicated region fallthrough
CT: control target
= control target key end

     0   :  { %8 = vsyncpa [#allocation3], 0  ;;  %s721_s0 = inlined_call_operand.hbm [shape: f32[16,32], index: 0, kind: input, shape index: {}]   ;;  %s722_s1 = inlined_call_operand.hbm [shape: bf16[32,32], index: 1, kind: input, shape index: {}]   ;;  %s723_s2 = inlined_call_operand.vmem [shape: f32[1,32], index: 2, kind: input, shape index: {}]   ;;  %s724_s3 = inlined_call_operand.hbm [shape: f32[16,32], index: 3, kind: output, shape index: {}]  }
   0x1   :  { %10 = vsyncpa [#allocation3 + $0x1], 0 }
   0x2   :  { %11 = vsyncpa [#allocation6], 0 }
   0x3   :  { %12 = vsyncpa [#allocation4], 0 }
   0x4   :  { %14 = vsyncpa [#allocation4 + $0x1], 0  ;;  %s582_s12 = smov 0   ;;  %s584_s13 = smov 0  }
   0x5   :  { %s586_s14 = smov 0   ;;  %s588_s15 = smov 0  }
   0x6 LB: > { %s130_s18 = sshll.u32 %s722_s1, 4  ;;  %s606_s19 = sadd.s32 4294967295, %s557_s15   ;;  %s557_s15 = sphi %s588_s15, %s734_s15   ;;  %s553_s14 = sphi %s586_s14, %s733_s14   ;;  %s549_s13 = sphi %s584_s13, %s732_s13   ;;  %s545_s12 = sphi %s582_s12, %s731_s12   ;;  %s131_s18 = int_to_ptr.hbm [resolvable:$true] %s130_s18 }
   0x7   : > { %p343_p0 = scmp.ge.s32.totalorder %s557_s15, 1  ;;  %p41_p1 = scmp.eq.s32.totalorder %s606_s19, 0 }
   0x8   : > { %p119_p2 = scmp.lt.s32.totalorder %s557_s15, 3  ;;  %s559_s21 = smov [#allocation5]  }
   0x9   : > { %s132_s22 = sshll.u32 %s559_s21, 4  ;;  %s560_s23 = smov 64   ;;  %s133_s22 = int_to_ptr.vmem [resolvable:$true] %s132_s22 }
   0xa   : > { %p611_p3 = pnand %p343_p0, %p119_p2  ;;  %s561_s24 = smov 4  }
   0xb   : > { %s342_s25 = sadd.s32 4294967294, %s557_s15   ;;  %s622_s26 = sadd.s32 1, %s557_s15  }
   0xc   : > { %p375_p4 = pneg %p611_p3  ;;  %s27_s27 = sadd.s32 1, %s553_s14 }
   0xd   : > { %s24_s28 = ssub.s32 %s557_s15, %s622_s26  ;;  %p34_p7 = scmp.ne.s32.totalorder %s553_s14, %s549_s13 }
   0xe   : > { %p376_p6 = pnand %p375_p4, %p41_p1  ;;  %p25_p8 = scmp.eq.s32.totalorder %s24_s28, 0 }
   0xf   : > { %p35_p9 = scmp.eq.s32.totalorder %s557_s15, 0  ;;  %p40_p10 = scmp.ne.s32.totalorder %s549_s13, %s545_s12 }
  0x10   : > { %378 = dma.hbm_to_vmem [thread:$0]  (!%p376_p6), %s131_s18, 256, %s133_s22, [#allocation6], %s560_s23, %s560_s23, %s561_s24  }
  0x11   : > { %p106_p11 = scmp.eq.s32.totalorder %s606_s19, 1  ;;  %p638_p12 = por %p41_p1, %p40_p10 }
  0x12   : > { %s634_s29 = scalar_select %p25_p8, %s553_s14, %s27_s27  }
  0x13   : > { %p642_p13 = por %p106_p11, %p34_p7  ;;  %p112_p0 = scmp.eq.s32.totalorder %s342_s25, 1 }
  0x14   : > { %p36_p2 = por %p35_p9, %p34_p7  ;;  %s149_s5 = sand.u32 1, %s553_s14  }
  0x15   : > { %p647_p4 = por %p112_p0, %p40_p10  ;;  %p388_p6 = scmp.lt.s32.totalorder %s557_s15, 2 }
  0x16   : > { %s346_s7 = sshll.u32 %s149_s5, 3  ;;  %s347_s8 = sshll.u32 %s557_s15, 3 }
  0x17   : > { %s157_s11 = scalar_lea.hbm %s721_s0, %s347_s8  ;;  %s153_s17 = scalar_lea.vmem [#allocation2], %s346_s7 }
  0x18   : > { %s159_s16 = sshll.u32 %s157_s11, 4  ;;  %s161_s18 = sshll.u32 %s153_s17, 4  ;;  %s160_s16 = int_to_ptr.hbm [resolvable:$true] %s159_s16  ;;  %s162_s18 = int_to_ptr.vmem [resolvable:$true] %s161_s18 }
  0x19   : > { %p656_p8 = pnand %p388_p6, %p36_p2  ;;  %s150_s22 = scalar_lea.sflag [#allocation3], %s149_s5 }
  0x1a   : > { %s457_s23 = sshra.s32 %s160_s16, 4  ;;  %s464_s28 = scalar_lea.hbm %s721_s0, 16  ;;  %s458_s23 = int_to_ptr.hbm [resolvable:$true] %s457_s23 }
  0x1b   : > { %s459_s24 = scalar_lea.hbm %s458_s23, 8  ;;  %p461_p9 = pneg %p656_p8 }
  0x1c   : > { %p460_p7 = scmp.ne.s32.totalorder %s458_s23, %s459_s24  ;;  %p465_p0 = scmp.lt.s32.totalorder %s458_s23, %s721_s0 }
  0x1d   : > { %p466_p2 = scmp.lt.s32.totalorder %s464_s28, %s459_s24 }
  0x1e   : > { %p462_p10 = pnand %p461_p9, %p460_p7 }
  0x1f   : > { %p467_p6 = por %p466_p2, %p465_p0 }
  0x20   : > { %p463_p11 = pneg %p462_p10 }
  0x22   : > { %p468_p5 = pnand %p467_p6, %p463_p11 }
  0x24   : > { %471 = shalt.err (!%p468_p5)
}
  0x25   : > { %382 = dma.hbm_to_vmem [thread:$0]  (!%p656_p8), %s160_s16, 128, %s162_s18, %s150_s22  }
  0x26   : > { %170 = sbr.rel (%p611_p3) target bundleno = 188 (0xbc), region = 32  ;;  %s673_s5 = sand.u32 (!%p611_p3), 1, %s549_s13  }
  0x27   : > { %s349_s9 = sshll.u32 (!%p611_p3), %s673_s5, 3  ;;  %s173_s10 = scalar_lea.sflag (!%p611_p3), [#allocation3], %s673_s5 }
  0x28   : > { %s176_s11 = scalar_lea.vmem (!%p611_p3), [#allocation2], %s349_s9 }
  0x2b   : > { %532 = dma.done.wait (%p638_p12), %s173_s10, 128  }
  0x2c   : > { %534 = vsyncadd (%p638_p12), %s173_s10, 4294967168 }
  0x2d   : > { %536 = dma.done.wait (%p41_p1), [#allocation6], 256  }
  0x2e   : > { %538 = vsyncadd (%p41_p1), [#allocation6], 4294967040  ;;  %v366_v0 = vld [vmem:[#allocation5 + $0x8] sm:$0xff]  ;;  %v365_v1 = vld [vmem:[#allocation5] sm:$0xff]  ;;  %vm228_vm0 = vcmask 261120   ;;  %s362_s20 = sshll.u32 %s606_s19, 3 }
  0x2f   : > { %238 = vmatpush.bf16.msra.mxu0 %v366_v0  ;;  %v206_v2 = vld [vmem:[%s176_s11] sm:$0xff]  ;;  %s257_s17 = scalar_lea.hbm %s724_s3, %s362_s20  ;;  %s204_s22 = scalar_lea.vmem [#allocation7], %s349_s9 }
  0x30   : > { %v207_v3 = vpack.c.bf16 %v206_v2, %v206_v2  ;;  %v426_v4 = vld [vmem:[%s723_s2] ss:$0 sm:$0xff]  ;;  %s259_s23 = sshll.u32 %s204_s22, 4  ;;  %s261_s24 = sshll.u32 %s257_s17, 4  ;;  %s260_s23 = int_to_ptr.vmem [resolvable:$true] %s259_s23  ;;  %s262_s24 = int_to_ptr.hbm [resolvable:$true] %s261_s24 }
  0x31   : > { %s247_s25 = scalar_lea.sflag [#allocation4], %s673_s5  ;;  %s501_s27 = sshra.s32 %s262_s24, 4  ;;  %s502_s27 = int_to_ptr.hbm [resolvable:$true] %s501_s27 }
  0x32   : > { %s503_s19 = scalar_lea.hbm %s502_s27, 8  ;;  %s507_s8 = scalar_lea.hbm %s724_s3, 16 }
  0x33   : > { %239 = vmatpush.bf16.msra.mxu0 %v365_v1  ;;  %p504_p1 = scmp.ne.s32.totalorder %s502_s27, %s503_s19  ;;  %p508_p12 = scmp.lt.s32.totalorder %s502_s27, %s724_s3 }
  0x34   : > { %p509_p8 = scmp.lt.s32.totalorder %s507_s8, %s503_s19 }
  0x35   : > { %p505_p3 = pnand %p504_p1, %p642_p13 }
  0x36   : > { %360 = vmatmul.msk.bf16.vlgmr.msra.gmra.mxu0 %vm228_vm0, %v207_v3  ;;  %p510_p7 = por %p509_p8, %p508_p12 }
  0x37   : > { %p506_p5 = pneg %p505_p3 }
  0x39   : > { %p511_p9 = pnand %p510_p7, %p506_p5 }
  0xb3   : > { %v241_v5 = vpop.f32.mrf.mxu0 }
  0xb4   : > { %v242_v6 = vadd.f32 %v426_v4, %v241_v5 }
  0xb6   : > { %245 = vst.msk [vmem:[%s204_s22] sm:$0xff] %vm228_vm0, %v242_v6 }
  0xb7   : > { %514 = shalt.err (!%p511_p9)
}
  0xb8   : > { %373 = dma.vmem_to_hbm [thread:$0]  (%p642_p13), %s260_s23, 128, %s262_s24, %s247_s25  }
  0xbb   : > { %v243_v7 = vpop.f32.mrf.mxu0 }
  0xbc PF: > { %s273_s5 = sand.u32 1, %s545_s12   ;;  %p730_p10 = scmp.ge.s32.totalorder %s557_s15, 2 }
  0xbd   : > { %s274_s11 = scalar_lea.sflag [#allocation4], %s273_s5 }
  0xbe   : > { %p384_p11 = pnand %p730_p10, %p647_p4 }
  0xc0   : > { %p385_p0 = pneg %p384_p11 }
  0xc2   : > { %540 = dma.done.wait (%p385_p0), %s274_s11, 128  }
  0xc3   : > { %542 = vsyncadd (%p385_p0), %s274_s11, 4294967168  ;;  %p17_p2 = scmp.ge.s32.totalorder %s622_s26, 4   ;;  %s731_s12 = smov %s549_s13 }
  0xc4   : > { %s732_s13 = smov %s553_s14  ;;  %s733_s14 = smov %s634_s29 }
  0xc5   : > { %s734_s15 = smov %s622_s26  ;;  %19 = sbr.rel (!%p17_p2) target bundleno = 6 (0x6), region = 81 }
  0xca   :  { %280 = vsyncpa [#allocation3], 1 }
  0xcb   :  { %282 = vsyncpa [#allocation3 + $0x1], 1 }
  0xcc   :  { %283 = vsyncpa [#allocation6], 1 }
  0xcd   :  { %284 = vsyncpa [#allocation4], 1 }
  0xce   :  { %286 = vsyncpa [#allocation4 + $0x1], 1 }

</bundles_post_ra>
